<compile_context>
chip_gen: v7x
topology: tpu7x:2x2x1
jax: 0.10.0
libtpu: 0.0.40
codegen_flags: <defaults>
</compile_context>

<pallas_src>
import jax
import jax.numpy as jnp
from jax.experimental import pallas as pl
from jax.experimental.pallas import tpu as pltpu


# ~2 MiB per tile -> 2x(in)+2x(out) double-buffered stays well under the
# smallest default scoped-VMEM budget (v5e: 16 MiB), and leaves headroom on
# v7x's 64 MiB physical / 32 MiB scoped VMEM.
_TILE_BYTES = 2 * 1024 * 1024


def _copy_kernel(x_ref, o_ref):
    # Straight lane-dense 2D copy: one vld/vst stream, no relayout.
    o_ref[...] = x_ref[...]


def _choose_2d_view(total_elems, itemsize):
    """Pick a lane-dense (rows, width) view of a contiguous buffer.

    Returns (W, R, block_rows) or None if the buffer can't be tiled cleanly
    (in which case the caller falls back to a pure reshape).
    """
    for W in (2048, 1024, 512, 256, 128):
        if total_elems % W == 0:
            R = total_elems // W
            # Largest multiple-of-8 row count that keeps the tile <= budget.
            max_rows = max(8, (_TILE_BYTES // (W * itemsize)) // 8 * 8)
            if R <= max_rows:
                block_rows = R          # full-extent block (grid of 1)
            else:
                block_rows = max_rows   # multiple of 8 -> satisfies (8,128)
            return W, R, block_rows
    return None


def reconstruct_no_condi_forward(x_condi, x, *, use_kernel=True):
    """x: (B, 1, L, L) -> (B, L, L).  x_condi is unused (matches PyTorch)."""
    del x_condi  # unused by the reference module
    B, C, L1, L2 = x.shape
    assert C == 1, "reference module assumes a single channel"
    out_shape = (B, L1, L2)

    if not use_kernel:
        # Fastest path on every generation: channel-select of a singleton
        # channel is a zero-cost metadata reshape (no HBM traffic at all).
        return jnp.reshape(x, out_shape)

    total = B * L1 * L2
    view = _choose_2d_view(total, jnp.dtype(x.dtype).itemsize)
    if view is None:
        # Buffer too small / not 128-divisible: a kernel would be pure
        # overhead, so use the free metadata reshape.
        return jnp.reshape(x, out_shape)

    W, R, block_rows = view
    # Contiguous buffer -> lane-dense 2D view (free bitcast/view in XLA).
    x2d = jnp.reshape(x, (R, W))

    grid = (pl.cdiv(R, block_rows),)
    out2d = pl.pallas_call(
        _copy_kernel,
        out_shape=jax.ShapeDtypeStruct((R, W), x.dtype),
        grid_spec=pltpu.PrefetchScalarGridSpec(
            num_scalar_prefetch=0,
            grid=grid,
            in_specs=[pl.BlockSpec((block_rows, W), lambda r: (r, 0))],
            out_specs=pl.BlockSpec((block_rows, W), lambda r: (r, 0)),
        ),
        compiler_params=pltpu.CompilerParams(
            # Independent row-blocks: shard across v7x's two TensorCores.
            dimension_semantics=("parallel",),
        ),
    )(x2d)

    return jnp.reshape(out2d, out_shape)


if __name__ == "__main__":
    key = jax.random.PRNGKey(0)
    k1, k2, k3, k4 = jax.random.split(key, 4)

    # Primary small-shape check (B=2, L=16).
    B, L = 2, 16
    x_condi = jax.random.normal(k1, (B, L, L), dtype=jnp.float32)
    x = jax.random.normal(k2, (B, 1, L, L), dtype=jnp.float32)

    out = reconstruct_no_condi_forward(x_condi, x)
    out = jax.block_until_ready(out)

    ref = x[:, 0]
    assert out.shape == (B, L, L), out.shape
    assert out.dtype == x.dtype
    assert bool(jnp.all(out == ref))

    # Secondary check exercising the lane-dense tiled path with a larger slab.
    B2, L2_ = 2, 128
    x_condi2 = jax.random.normal(k3, (B2, L2_, L2_), dtype=jnp.float32)
    x2 = jax.random.normal(k4, (B2, 1, L2_, L2_), dtype=jnp.float32)

    out2 = reconstruct_no_condi_forward(x_condi2, x2)
    out2 = jax.block_until_ready(out2)
    assert out2.shape == (B2, L2_, L2_), out2.shape
    assert bool(jnp.all(out2 == x2[:, 0]))

    print("KERNEL_OK")
</pallas_src>

<mosaic_0001>
module attributes {stable_mosaic.version = 11 : i64} {
  func.func @_copy_kernel(%arg0: i32, %arg1: memref<1x512xf32, #tpu.memory_space<vmem>>, %arg2: memref<1x512xf32, #tpu.memory_space<vmem>>) attributes {dimension_semantics = [#tpu.dimension_semantics<parallel>], iteration_bounds = array<i64: 1>, scalar_prefetch = 0 : i64, scratch_operands = 0 : i64, tpu.core_type = #tpu.core_type<tc>, window_params = [{transform_indices = @transform_0, window_bounds = array<i64: 1, 512>}, {transform_indices = @transform_1, window_bounds = array<i64: 1, 512>}]} {
    %c0 = arith.constant 0 : index
    %c0_0 = arith.constant 0 : index
    %0 = vector.load %arg1[%c0, %c0_0] : memref<1x512xf32, #tpu.memory_space<vmem>>, vector<1x512xf32>
    %c0_1 = arith.constant 0 : index
    %c0_2 = arith.constant 0 : index
    %1 = vector.load %arg2[%c0_1, %c0_2] : memref<1x512xf32, #tpu.memory_space<vmem>>, vector<1x512xf32>
    tpu.vector_store %arg2[%c0_1, %c0_2], %0 {strides = array<i32>} : memref<1x512xf32, #tpu.memory_space<vmem>>, vector<1x512xf32>,
    return
  }
  func.func @transform_0(%arg0: i32) -> (i32, i32) {
    %c0_i32 = arith.constant 0 : i32
    %c0_i32_0 = arith.constant 0 : i32
    return %arg0, %c0_i32 : i32, i32
  }
  func.func @transform_1(%arg0: i32) -> (i32, i32) {
    %c0_i32 = arith.constant 0 : i32
    %c0_i32_0 = arith.constant 0 : i32
    return %arg0, %c0_i32 : i32, i32
  }
}

</mosaic_0001>

<bundles_post_ra>
// kernel: tpu_custom_call.1
= control target key start
LH: loop header
LB: loop body
LE: loop exit
PB: predicated region body
PF: predicated region fallthrough
CT: control target
= control target key end

     0   :  { %6 = vsyncpa [#allocation3], 0  ;;  %s128_s0 = inlined_call_operand.hbm [shape: f32[1,512], index: 0, kind: input, shape index: {}]   ;;  %s129_s1 = inlined_call_operand.hbm [shape: f32[1,512], index: 1, kind: output, shape index: {}]  }
   0x1   :  { %7 = vsyncpa [#allocation4], 0  ;;  %s92_s6 = smov [#allocation2]   ;;  %s44_s10 = scalar_lea.hbm %s128_s0, 64 }
   0x2   :  { %s14_s7 = sshll.u32 %s92_s6, 4  ;;  %p45_p0 = scmp.ne.s32.totalorder %s128_s0, %s44_s10  ;;  %s15_s7 = int_to_ptr.vmem [resolvable:$true] %s14_s7 }
   0x3   :  { %p48_p1 = scmp.lt.u32.totalorder %s44_s10, %s128_s0 }
   0x5   :  { %p50_p2 = pnand %p48_p1, %p45_p0 }
   0x7   :  { %53 = shalt.err (!%p50_p2)
}
   0x8   :  { %s54_s15 = scalar_lea.vmem %s15_s7, 64  ;;  %p59_p4 = scmp.lt.s32.totalorder %s15_s7, %s15_s7 }
   0x9   :  { %p55_p3 = scmp.ne.s32.totalorder %s15_s7, %s54_s15  ;;  %p60_p5 = scmp.lt.s32.totalorder %s54_s15, %s54_s15 }
   0xb   :  { %p61_p6 = por %p60_p5, %p59_p4 }
   0xd   :  { %p62_p7 = pnand %p61_p6, %p55_p3 }
   0xf   :  { %65 = shalt.err (!%p62_p7)
}
  0x10   :  { %17 = dma.hbm_to_vmem [thread:$0]  %s128_s0, 64, %s15_s7, [#allocation3]  }
  0x11   :  { %88 = dma.done.wait [#allocation3], 64  }
  0x12   :  { %89 = vsyncadd [#allocation3], 4294967232  ;;  %v22_v0 = vlaneseq  ;;  %s93_s18 = smov [#allocation5]   ;;  %v21_v1 = vld [vmem:[#allocation2] sm:$0xf] }
  0x13   :  { %s33_s19 = sshll.u32 %s93_s18, 4  ;;  %s34_s19 = int_to_ptr.vmem [resolvable:$true] %s33_s19 }
  0x14   :  { %vm24_vm0 = vcmp.lt.s32.totalorder %v22_v0, 512  ;;  %s66_s20 = scalar_lea.vmem %s34_s19, 64  ;;  %p71_p9 = scmp.lt.s32.totalorder %s34_s19, %s34_s19 }
  0x15   :  { %26 = vst.msk [vmem:[#allocation5] sm:$0xf] %vm24_vm0, %v21_v1  ;;  %p67_p8 = scmp.ne.s32.totalorder %s34_s19, %s66_s20  ;;  %p72_p10 = scmp.lt.s32.totalorder %s66_s20, %s66_s20 }
  0x17   :  { %p73_p11 = por %p72_p10, %p71_p9 }
  0x19   :  { %p74_p12 = pnand %p73_p11, %p67_p8 }
  0x1b   :  { %77 = shalt.err (!%p74_p12)
}
  0x1c   :  { %s78_s0 = scalar_lea.hbm %s129_s1, 64 }
  0x1d   :  { %p79_p13 = scmp.ne.s32.totalorder %s129_s1, %s78_s0  ;;  %p82_p0 = scmp.lt.u32.totalorder %s78_s0, %s129_s1 }
  0x1f   :  { %p84_p1 = pnand %p82_p0, %p79_p13 }
  0x21   :  { %87 = shalt.err (!%p84_p1)
}
  0x22   :  { %36 = dma.vmem_to_hbm [thread:$0]  %s34_s19, 64, %s129_s1, [#allocation4]  }
  0x23   :  { %90 = dma.done.wait [#allocation4], 64  }
  0x24   :  { %91 = vsyncadd [#allocation4], 4294967232 }
  0x25   :  { %40 = vsyncpa [#allocation3], 1 }
  0x26   :  { %41 = vsyncpa [#allocation4], 1 }

</bundles_post_ra>
